<compile_context>
chip_gen: v7x
topology: tpu7x:2x2x1
jax: 0.10.0
libtpu: 0.0.40
codegen_flags: <defaults>
</compile_context>

<pallas_src>
import jax
import jax.numpy as jnp
from jax.experimental import pallas as pl
from jax.experimental.pallas import tpu as pltpu


def _round_up(x, m):
    return ((x + m - 1) // m) * m


# ---------------------------------------------------------------------------
# Fused SGC kernel: one (dst-tile, src-tile) grid point.
#   adj_ref : (tm, tk)   int8  adjacency tile A[dst, src] (0/1)
#   xn_ref  : (tk, F)    bf16  norm-scaled src features (x * deg^-1/2)
#   w_ref   : (F, Cpad)  bf16  classifier weight (VMEM-resident)
#   ndst_ref: (tm, 1)    f32   dst-side norm (deg^-1/2)
#   b_ref   : (1, Cpad)  f32   bias (VMEM-resident)
#   o_ref   : (tm, Cpad) f32   output tile, resident across the src axis
# ---------------------------------------------------------------------------
def sgc_kernel(adj_ref, xn_ref, w_ref, ndst_ref, b_ref, o_ref):
    k = pl.program_id(1)

    @pl.when(k == 0)
    def _():
        o_ref[...] = jnp.zeros_like(o_ref)

    # Project the src tile on the fly: z = (x * norm_src) @ W.T  (bf16 MXU, f32 acc)
    z = jnp.dot(xn_ref[...], w_ref[...], preferred_element_type=jnp.float32)

    # Propagate: A_tile @ z_tile accumulated into the resident output block.
    adj = adj_ref[...].astype(jnp.bfloat16)          # int8 (0/1) -> bf16, VPU slot
    o_ref[...] += jnp.dot(adj, z.astype(jnp.bfloat16),
                          preferred_element_type=jnp.float32)

    @pl.when(k == pl.num_programs(1) - 1)
    def _():
        o_ref[...] = o_ref[...] * ndst_ref[...] + b_ref[...]


def sgc_forward(adj, x, weight, bias, *, tm=1024, tk=2048):
    """adj: (N, N) dense adjacency (A[dst, src]=1); x: (N, F); weight: (C, F); bias: (C,)."""
    N, F = x.shape
    C = weight.shape[0]

    # --- tile / padding geometry -------------------------------------------
    Cpad = _round_up(C, 128)                                  # lane-dense output width
    n128 = _round_up(N, 128)
    tm = _round_up(min(max(tm, 128), n128), 128)              # dst-row tile (mult of 128)
    tk = _round_up(min(max(tk, 128), n128), 128)              # src-col tile (mult of 128)
    if N > 128:                                               # keep >=2 dst tiles (v7x 2 TCs)
        tm = min(tm, max(128, _round_up((N + 1) // 2, 128)))
    Npad_dst = _round_up(N, tm)                               # independent dst/src padding
    Npad_src = _round_up(N, tk)

    # --- host-side glue (no padded f32 adjacency intermediate) --------------
    deg = jnp.sum(adj.astype(jnp.float32), axis=1, keepdims=True)   # in-degrees (N, 1)
    norm = jax.lax.rsqrt(jnp.maximum(deg, 1.0))                     # (N, 1) f32
    # NOTE: in-degree norm on both sides matches the reference; DGL on a directed
    # graph would use out-degree on the src side (equivalent here: symmetric adj).

    adj_i8 = jnp.zeros((Npad_dst, Npad_src), jnp.int8)
    adj_i8 = adj_i8.at[:N, :N].set(adj.astype(jnp.int8))            # 0/1 exact in int8
    xn = jnp.zeros((Npad_src, F), jnp.bfloat16)
    xn = xn.at[:N, :].set((x.astype(jnp.float32) * norm).astype(jnp.bfloat16))
    ndst = jnp.zeros((Npad_dst, 1), jnp.float32).at[:N, :].set(norm)
    w_bf = jnp.zeros((F, Cpad), jnp.bfloat16).at[:, :C].set(weight.T.astype(jnp.bfloat16))
    b_pad = jnp.zeros((1, Cpad), jnp.float32).at[0, :C].set(bias.astype(jnp.float32))

    out = pl.pallas_call(
        sgc_kernel,
        out_shape=jax.ShapeDtypeStruct((Npad_dst, Cpad), jnp.float32),
        grid_spec=pltpu.PrefetchScalarGridSpec(
            num_scalar_prefetch=0,
            grid=(Npad_dst // tm, Npad_src // tk),            # reduction (src) axis last
            in_specs=[
                pl.BlockSpec((tm, tk), lambda i, k: (i, k)),      # adjacency (int8)
                pl.BlockSpec((tk, F), lambda i, k: (k, 0)),       # norm-scaled src feats
                pl.BlockSpec((F, Cpad), lambda i, k: (0, 0)),     # W (resident)
                pl.BlockSpec((tm, 1), lambda i, k: (i, 0)),       # dst norm
                pl.BlockSpec((1, Cpad), lambda i, k: (0, 0)),     # bias (resident)
            ],
            out_specs=pl.BlockSpec((tm, Cpad), lambda i, k: (i, 0)),
        ),
        compiler_params=pltpu.CompilerParams(
            dimension_semantics=("parallel", "arbitrary"),
        ),
    )(adj_i8, xn, w_bf, ndst, b_pad)

    return out[:N, :C]


def sgc_reference(adj, x, weight, bias):
    deg = jnp.sum(adj, axis=-1, keepdims=True)
    norm = jax.lax.rsqrt(jnp.maximum(deg, 1.0))
    h = (adj @ (x * norm)) * norm
    return h @ weight.T + bias[None, :]


if __name__ == "__main__":
    N, in_feats, n_classes = 128, 32, 32   # module defaults: in_feats=32, n_classes=32

    key = jax.random.PRNGKey(0)
    k_adj, k_x, k_w, k_b = jax.random.split(key, 4)

    # Deterministic synthetic graph: sparse-ish symmetric adjacency, self-loops
    # added so every node has in-degree >= 1.
    rand = jax.random.uniform(k_adj, (N, N))
    a = (rand < 0.08).astype(jnp.float32)
    adj = jnp.clip(a + a.T + jnp.eye(N, dtype=jnp.float32), 0.0, 1.0)

    x = jax.random.normal(k_x, (N, in_feats), dtype=jnp.float32)

    # Deterministic parameter init (shapes from nn.Linear(in_feats, n_classes)).
    bound = 1.0 / (in_feats ** 0.5)
    weight = jax.random.uniform(k_w, (n_classes, in_feats), minval=-bound, maxval=bound)
    bias = jax.random.uniform(k_b, (n_classes,), minval=-bound, maxval=bound)

    out = jax.block_until_ready(sgc_forward(adj, x, weight, bias))
    ref = jax.block_until_ready(sgc_reference(adj, x, weight, bias))

    assert out.shape == (N, n_classes)
    # bf16 feature/weight operands on the MXU (f32 accumulate) -> looser tol.
    assert jnp.allclose(out, ref, atol=5e-2, rtol=5e-2), "mismatch vs reference"
    # TODO(synk): a true SpMM (scalar-prefetched CSR / block-sparse edge lists) would
    # avoid streaming the zeros of the dense adjacency; dense kept to match reference.
    print("KERNEL_OK")
</pallas_src>

<mosaic_0001>
module attributes {stable_mosaic.version = 11 : i64} {
  func.func @sgc_kernel(%arg0: i32, %arg1: i32, %arg2: memref<128x128xi8, #tpu.memory_space<vmem>>, %arg3: memref<128x32xbf16, #tpu.memory_space<vmem>>, %arg4: memref<32x128xbf16, #tpu.memory_space<vmem>>, %arg5: memref<128x1xf32, #tpu.memory_space<vmem>>, %arg6: memref<1x128xf32, #tpu.memory_space<vmem>>, %arg7: memref<128x128xf32, #tpu.memory_space<vmem>>) attributes {dimension_semantics = [#tpu.dimension_semantics<parallel>, #tpu.dimension_semantics<arbitrary>], iteration_bounds = array<i64: 1, 1>, scalar_prefetch = 0 : i64, scratch_operands = 0 : i64, tpu.core_type = #tpu.core_type<tc>, window_params = [{transform_indices = @transform_0, window_bounds = array<i64: 128, 128>}, {transform_indices = @transform_1, window_bounds = array<i64: 128, 32>}, {pipeline_mode = #tpu.pipeline_mode<synchronous>, transform_indices = @transform_2, window_bounds = array<i64: 32, 128>}, {transform_indices = @transform_3, window_bounds = array<i64: 128, 1>}, {pipeline_mode = #tpu.pipeline_mode<synchronous>, transform_indices = @transform_4, window_bounds = array<i64: 1, 128>}, {transform_indices = @transform_5, window_bounds = array<i64: 128, 128>}]} {
    %c0_i32 = arith.constant 0 : i32
    %0 = arith.cmpi eq, %arg1, %c0_i32 : i32
    %1 = arith.extui %0 : i1 to i32
    %c0_i32_0 = arith.constant 0 : i32
    %2 = arith.cmpi ne, %1, %c0_i32_0 : i32
    scf.if %2 {
      %cst_13 = arith.constant 0.000000e+00 : f32
      %16 = vector.broadcast %cst_13 : f32 to vector<128x128xf32>
      %c0_14 = arith.constant 0 : index
      %c0_15 = arith.constant 0 : index
      %17 = vector.load %arg7[%c0_14, %c0_15] : memref<128x128xf32, #tpu.memory_space<vmem>>, vector<128x128xf32>
      tpu.vector_store %arg7[%c0_14, %c0_15], %16 {strides = array<i32>} : memref<128x128xf32, #tpu.memory_space<vmem>>, vector<128x128xf32>,
    } else {
    }
    %c0 = arith.constant 0 : index
    %c0_1 = arith.constant 0 : index
    %3 = vector.load %arg3[%c0, %c0_1] : memref<128x32xbf16, #tpu.memory_space<vmem>>, vector<128x32xbf16>
    %c0_2 = arith.constant 0 : index
    %c0_3 = arith.constant 0 : index
    %4 = vector.load %arg4[%c0_2, %c0_3] : memref<32x128xbf16, #tpu.memory_space<vmem>>, vector<32x128xbf16>
    %cst = arith.constant dense<0.000000e+00> : vector<128x128xf32>
    %5 = tpu.matmul %3, %4, %cst {dimension_numbers = #tpu.dot_dimension_numbers<[1], [0], [0], [1], [0, 0, 1, 1], [], []>} : vector<128x32xbf16>, vector<32x128xbf16>, vector<128x128xf32> -> vector<128x128xf32>
    %c0_4 = arith.constant 0 : index
    %c0_5 = arith.constant 0 : index
    %6 = vector.load %arg2[%c0_4, %c0_5] : memref<128x128xi8, #tpu.memory_space<vmem>>, vector<128x128xi8>
    %7 = arith.sitofp %6 : vector<128x128xi8> to vector<128x128xbf16>
    %c0_6 = arith.constant 0 : index
    %c0_7 = arith.constant 0 : index
    %8 = vector.load %arg7[%c0_6, %c0_7] : memref<128x128xf32, #tpu.memory_space<vmem>>, vector<128x128xf32>
    %9 = arith.truncf %5 : vector<128x128xf32> to vector<128x128xbf16>
    %cst_8 = arith.constant dense<0.000000e+00> : vector<128x128xf32>
    %10 = tpu.matmul %7, %9, %cst_8 {dimension_numbers = #tpu.dot_dimension_numbers<[1], [0], [0], [1], [0, 0, 1, 1], [], []>} : vector<128x128xbf16>, vector<128x128xbf16>, vector<128x128xf32> -> vector<128x128xf32>
    %11 = arith.addf %8, %10 : vector<128x128xf32>
    %c0_9 = arith.constant 0 : index
    %c0_10 = arith.constant 0 : index
    %12 = vector.load %arg7[%c0_9, %c0_10] : memref<128x128xf32, #tpu.memory_space<vmem>>, vector<128x128xf32>
    tpu.vector_store %arg7[%c0_9, %c0_10], %11 {strides = array<i32>} : memref<128x128xf32, #tpu.memory_space<vmem>>, vector<128x128xf32>,
    %c0_i32_11 = arith.constant 0 : i32
    %13 = arith.cmpi eq, %arg1, %c0_i32_11 : i32
    %14 = arith.extui %13 : i1 to i32
    %c0_i32_12 = arith.constant 0 : i32
    %15 = arith.cmpi ne, %14, %c0_i32_12 : i32
    scf.if %15 {
      %c0_13 = arith.constant 0 : index
      %c0_14 = arith.constant 0 : index
      %16 = vector.load %arg7[%c0_13, %c0_14] : memref<128x128xf32, #tpu.memory_space<vmem>>, vector<128x128xf32>
      %c0_15 = arith.constant 0 : index
      %c0_16 = arith.constant 0 : index
      %17 = vector.load %arg5[%c0_15, %c0_16] : memref<128x1xf32, #tpu.memory_space<vmem>>, vector<128x1xf32>
      %18 = vector.broadcast %17 : vector<128x1xf32> to vector<128x128xf32>
      %19 = arith.mulf %16, %18 : vector<128x128xf32>
      %c0_17 = arith.constant 0 : index
      %c0_18 = arith.constant 0 : index
      %20 = vector.load %arg6[%c0_17, %c0_18] : memref<1x128xf32, #tpu.memory_space<vmem>>, vector<1x128xf32>
      %21 = vector.broadcast %20 : vector<1x128xf32> to vector<128x128xf32>
      %22 = arith.addf %19, %21 : vector<128x128xf32>
      %c0_19 = arith.constant 0 : index
      %c0_20 = arith.constant 0 : index
      %23 = vector.load %arg7[%c0_19, %c0_20] : memref<128x128xf32, #tpu.memory_space<vmem>>, vector<128x128xf32>
      tpu.vector_store %arg7[%c0_19, %c0_20], %22 {strides = array<i32>} : memref<128x128xf32, #tpu.memory_space<vmem>>, vector<128x128xf32>,
    } else {
    }
    return
  }
  func.func @transform_0(%arg0: i32, %arg1: i32) -> (i32, i32) {
    %c0_i32 = arith.constant 0 : i32
    return %arg0, %arg1 : i32, i32
  }
  func.func @transform_1(%arg0: i32, %arg1: i32) -> (i32, i32) {
    %c0_i32 = arith.constant 0 : i32
    %c0_i32_0 = arith.constant 0 : i32
    return %arg1, %c0_i32 : i32, i32
  }
  func.func @transform_2(%arg0: i32, %arg1: i32) -> (i32, i32) {
    %c0_i32 = arith.constant 0 : i32
    %c0_i32_0 = arith.constant 0 : i32
    %c0_i32_1 = arith.constant 0 : i32
    return %c0_i32, %c0_i32_0 : i32, i32
  }
  func.func @transform_3(%arg0: i32, %arg1: i32) -> (i32, i32) {
    %c0_i32 = arith.constant 0 : i32
    %c0_i32_0 = arith.constant 0 : i32
    return %arg0, %c0_i32 : i32, i32
  }
  func.func @transform_4(%arg0: i32, %arg1: i32) -> (i32, i32) {
    %c0_i32 = arith.constant 0 : i32
    %c0_i32_0 = arith.constant 0 : i32
    %c0_i32_1 = arith.constant 0 : i32
    return %c0_i32, %c0_i32_0 : i32, i32
  }
  func.func @transform_5(%arg0: i32, %arg1: i32) -> (i32, i32) {
    %c0_i32 = arith.constant 0 : i32
    %c0_i32_0 = arith.constant 0 : i32
    return %arg0, %c0_i32 : i32, i32
  }
}

</mosaic_0001>

<bundles_post_ra>
// kernel: tpu_custom_call.1
= control target key start
LH: loop header
LB: loop body
LE: loop exit
PB: predicated region body
PF: predicated region fallthrough
CT: control target
= control target key end

     0   :  { %vm114_vm0 = vcmask 261120   ;;  %s914_s0 = inlined_call_operand.vmem [shape: s8[128,128], index: 0, kind: input, shape index: {}]   ;;  %s915_s1 = inlined_call_operand.vmem [shape: bf16[128,32], index: 1, kind: input, shape index: {}]   ;;  %s916_s2 = inlined_call_operand.vmem [shape: bf16[32,128], index: 2, kind: input, shape index: {}]   ;;  %s917_s3 = inlined_call_operand.vmem [shape: f32[128,1], index: 3, kind: input, shape index: {}]   ;;  %s918_s4 = inlined_call_operand.vmem [shape: f32[1,128], index: 4, kind: input, shape index: {}]   ;;  %s919_s5 = inlined_call_operand.hbm [shape: f32[128,128], index: 5, kind: output, shape index: {}]  }
   0x1   :  { %v707_v0 = vld [vmem:[%s916_s2] sm:$0xff]   ;;  %v708_v1 = vld [vmem:[%s916_s2 + $0x8] sm:$0xff]   ;;  %v711_v4 = vld [vmem:[%s915_s1 + $0x10] sm:$0xff]  }
   0x2   :  { %632 = vmatprep.subr.bf16.mxu0 %v707_v0  ;;  %v709_v2 = vld [vmem:[%s915_s1] sm:$0xff]   ;;  %v710_v3 = vld [vmem:[%s915_s1 + $0x8] sm:$0xff]  }
   0x3   :  { %633 = vmatpush3.bf16.msra.mxu0 %v707_v0  ;;  %636 = vmatprep.mubr.msk.bf16.mxu0 %vm114_vm0, %v709_v2 }
   0x4   :  { %634 = vmatprep.subr.bf16.mxu0 %v708_v1 }
   0x7   :  { %635 = vmatpush3.bf16.msra.mxu0 %v708_v1 }
   0xa   :  { %637 = vmatmul.mubr.msk.bf16.vlgmr.msra.gmra.mrb[0].mxu0 %vm114_vm0, %v710_v3 }
   0xb   :  { %10 = vsyncpa [#allocation3], 0  ;;  %640 = vmatprep.mubr.msk.bf16.mxu0 %vm114_vm0, %v711_v4  ;;  %v712_v5 = vld [vmem:[%s915_s1 + $0x18] sm:$0xff]   ;;  %v713_v6 = vld [vmem:[%s915_s1 + $0x20] sm:$0xff]   ;;  %v741_v16 = vmov 0  }
   0xc   :  { %v714_v7 = vld [vmem:[%s915_s1 + $0x28] sm:$0xff]   ;;  %v715_v8 = vld [vmem:[%s915_s1 + $0x30] sm:$0xff]   ;;  %v716_v9 = vld [vmem:[%s915_s1 + $0x38] sm:$0xff]   ;;  %706 = vset.pattern.permute.xlu1 %v741_v16  ;;  %705 = vset.pattern.permute.xlu0 %v741_v16 }
   0xd   :  { %v816_v10 = vld [vmem:[%s914_s0] sm:$0xff]  ;;  %v821_v11 = vld [vmem:[%s914_s0 + $0x8] sm:$0xff]  ;;  %v422_v14 = vld [vmem:[%s917_s3 + $0x10] sm:$0xff] }
   0xe   :  { %v240_v12 = vunpack.c.l.s8.bf16 %v816_v10  ;;  %v242_v13 = vunpack.c.l.s8.bf16 %v821_v11  ;;  %v420_v15 = vld [vmem:[%s917_s3] sm:$0xff]  ;;  %448 = vperm.xlu1 %706, %v422_v14   ;;  %v423_v17 = vld [vmem:[%s917_s3 + $0x18] sm:$0xff]  ;;  %v421_v18 = vld [vmem:[%s917_s3 + $0x8] sm:$0xff]  ;;  %v241_v56 = vunpack.c.h.s8.bf16 %v816_v10  ;;  %v243_v57 = vunpack.c.h.s8.bf16 %v821_v11 }
   0xf   :  { %438 = vperm.xlu0 %705, %v420_v15   ;;  %v425_v19 = vld [vmem:[%s917_s3 + $0x28] sm:$0xff]  ;;  %v424_v20 = vld [vmem:[%s917_s3 + $0x20] sm:$0xff]  ;;  %v427_v21 = vld [vmem:[%s917_s3 + $0x38] sm:$0xff] }
  0x10   :  { %672 = vmatprep.mubr.bf16.mxu1 %v242_v13  ;;  %v426_v22 = vld [vmem:[%s917_s3 + $0x30] sm:$0xff]  ;;  %v429_v23 = vld [vmem:[%s917_s3 + $0x48] sm:$0xff]  ;;  %v428_v24 = vld [vmem:[%s917_s3 + $0x40] sm:$0xff] }
  0x11   :  { %v431_v25 = vld [vmem:[%s917_s3 + $0x58] sm:$0xff]  ;;  %v430_v26 = vld [vmem:[%s917_s3 + $0x50] sm:$0xff]  ;;  %v433_v27 = vld [vmem:[%s917_s3 + $0x68] sm:$0xff] }
  0x12   :  { %641 = vmatmul.mubr.msk.bf16.gmra.mrb[4].mxu0 %vm114_vm0, %v712_v5  ;;  %453 = vperm.xlu1 %706, %v423_v17   ;;  %v432_v28 = vld [vmem:[%s917_s3 + $0x60] sm:$0xff]  ;;  %v435_v29 = vld [vmem:[%s917_s3 + $0x78] sm:$0xff]  ;;  %v434_v30 = vld [vmem:[%s917_s3 + $0x70] sm:$0xff] }
  0x13   :  { %644 = vmatprep.mubr.msk.bf16.mxu0 %vm114_vm0, %v713_v6  ;;  %443 = vperm.xlu0 %705, %v421_v18   ;;  %v238_v55 = vld [vmem:[%s914_s0 + $0x10] sm:$0xff]  ;;  %v239_v59 = vld [vmem:[%s914_s0 + $0x18] sm:$0xff]  ;;  %v884_v13 = vld [vmem:[%s918_s4] ss:$0 sm:$0xff]  ;;  %s742_s4 = smov [#allocation2]  }
  0x14   :  { %v244_v58 = vunpack.c.l.s8.bf16 %v238_v55  ;;  %v245_v60 = vunpack.c.h.s8.bf16 %v238_v55  ;;  %v246_v61 = vunpack.c.l.s8.bf16 %v239_v59  ;;  %v247_v62 = vunpack.c.h.s8.bf16 %v239_v59  ;;  %s576_s24 = sshll.u32 %s742_s4, 4  ;;  %s577_s24 = int_to_ptr.vmem [resolvable:$true] %s576_s24 }
  0x15   :  { %s717_s25 = scalar_lea.vmem %s577_s24, 2048  ;;  %p722_p1 = scmp.lt.s32.totalorder %s577_s24, %s577_s24 }
  0x16   :  { %463 = vperm.xlu1 %706, %v425_v19   ;;  %p718_p0 = scmp.ne.s32.totalorder %s577_s24, %s717_s25  ;;  %p723_p2 = scmp.lt.s32.totalorder %s717_s25, %s717_s25 }
  0x17   :  { %458 = vperm.xlu0 %705, %v424_v20  }
  0x18   :  { %p724_p3 = por %p723_p2, %p722_p1 }
  0x1a   :  { %645 = vmatmul.mubr.msk.bf16.gmra.mrb[8].mxu0 %vm114_vm0, %v714_v7  ;;  %473 = vperm.xlu1 %706, %v427_v21   ;;  %p725_p4 = pnand %p724_p3, %p718_p0 }
  0x1b   :  { %648 = vmatprep.mubr.msk.bf16.mxu0 %vm114_vm0, %v715_v8  ;;  %468 = vperm.xlu0 %705, %v426_v22  }
  0x1e   :  { %483 = vperm.xlu1 %706, %v429_v23  }
  0x1f   :  { %478 = vperm.xlu0 %705, %v428_v24  }
  0x22   :  { %649 = vmatmul.mubr.msk.bf16.gmra.mrb[12].mxu0 %vm114_vm0, %v716_v9  ;;  %493 = vperm.xlu1 %706, %v431_v25  }
  0x23   :  { %668 = vmatprep.mubr.bf16.mxu0 %v240_v12  ;;  %488 = vperm.xlu0 %705, %v430_v26  }
  0x26   :  { %503 = vperm.xlu1 %706, %v433_v27  }
  0x27   :  { %498 = vperm.xlu0 %705, %v432_v28  }
  0x2a   :  { %513 = vperm.xlu1 %706, %v435_v29  }
  0x2b   :  { %508 = vperm.xlu0 %705, %v434_v30  }
  0x8d   :  { %v449_v63 = vpop.permute.xlu1 %448 }
  0x8e   :  { %v439_v0 = vpop.permute.xlu0 %438 }
  0x91   :  { %v454_v1 = vpop.permute.xlu1 %453 }
  0x92   :  { %v444_v2 = vpop.permute.xlu0 %443 }
  0x95   :  { %v464_v3 = vpop.permute.xlu1 %463 }
  0x96   :  { %v459_v4 = vpop.permute.xlu0 %458 }
  0x99   :  { %v474_v5 = vpop.permute.xlu1 %473 }
  0x9a   :  { %v469_v6 = vpop.permute.xlu0 %468 }
  0x9d   :  { %v484_v7 = vpop.permute.xlu1 %483 }
  0x9e   :  { %v479_v8 = vpop.permute.xlu0 %478 }
  0xa2   :  { %v489_v26 = vpop.permute.xlu0 %488 }
  0xdd   :  { %v638_v31 = vpop.f32.mrb[0].mxu0 }
  0xde   :  { %v173_v32 = vpop.f32.mrb[1].mxu0 }
  0xdf   :  { %v639_v33 = vpop.f32.mrb[2].mxu0 }
  0xe0   :  { %v265_v34 = vpack.c.bf16 %v639_v33, %v638_v31  ;;  %v176_v35 = vpop.f32.mrb[3].mxu0  ;;  %v494_v33 = vpop.permute.xlu1 %493 }
  0xe1   :  { %v264_v36 = vpack.c.bf16 %v176_v35, %v173_v32 }
  0xe3   :  { %652 = vmatprep.subr.bf16.mxu0 %v264_v36  ;;  %684 = vmatprep.subr.bf16.mxu1 %v264_v36 }
  0xe4   :  { %653 = vmatpush3.bf16.msra.mxu0 %v264_v36  ;;  %692 = vmatpush3.bf16.msra.mxu1 %v264_v36 }
  0xe5   :  { %v642_v37 = vpop.f32.mrb[4].mxu0  ;;  %654 = vmatprep.subr.bf16.mxu0 %v265_v34  ;;  %685 = vmatprep.subr.bf16.mxu1 %v265_v34 }
  0xe6   :  { %v189_v38 = vpop.f32.mrb[5].mxu0 }
  0xe7   :  { %v643_v39 = vpop.f32.mrb[6].mxu0 }
  0xe8   :  { %v267_v40 = vpack.c.bf16 %v643_v39, %v642_v37  ;;  %v192_v41 = vpop.f32.mrb[7].mxu0  ;;  %655 = vmatpush3.bf16.msra.mxu0 %v265_v34  ;;  %693 = vmatpush3.bf16.msra.mxu1 %v265_v34 }
  0xe9   :  { %v266_v42 = vpack.c.bf16 %v192_v41, %v189_v38  ;;  %v499_v41 = vpop.permute.xlu0 %498 }
  0xeb   :  { %656 = vmatprep.subr.bf16.mxu0 %v266_v42  ;;  %686 = vmatprep.subr.bf16.mxu1 %v266_v42 }
  0xec   :  { %657 = vmatpush3.bf16.msra.mxu0 %v266_v42  ;;  %694 = vmatpush3.bf16.msra.mxu1 %v266_v42 }
  0xed   :  { %v646_v43 = vpop.f32.mrb[8].mxu0  ;;  %658 = vmatprep.subr.bf16.mxu0 %v267_v40  ;;  %687 = vmatprep.subr.bf16.mxu1 %v267_v40 }
  0xee   :  { %v205_v44 = vpop.f32.mrb[9].mxu0 }
  0xef   :  { %v647_v45 = vpop.f32.mrb[10].mxu0 }
  0xf0   :  { %v269_v46 = vpack.c.bf16 %v647_v45, %v646_v43  ;;  %v208_v47 = vpop.f32.mrb[11].mxu0  ;;  %659 = vmatpush3.bf16.msra.mxu0 %v267_v40  ;;  %695 = vmatpush3.bf16.msra.mxu1 %v267_v40  ;;  %v504_v45 = vpop.permute.xlu1 %503 }
  0xf1   :  { %v268_v48 = vpack.c.bf16 %v208_v47, %v205_v44 }
  0xf3   :  { %660 = vmatprep.subr.bf16.mxu0 %v268_v48  ;;  %688 = vmatprep.subr.bf16.mxu1 %v268_v48 }
  0xf4   :  { %661 = vmatpush3.bf16.msra.mxu0 %v268_v48  ;;  %696 = vmatpush3.bf16.msra.mxu1 %v268_v48 }
  0xf5   :  { %v650_v49 = vpop.f32.mrb[12].mxu0  ;;  %662 = vmatprep.subr.bf16.mxu0 %v269_v46  ;;  %689 = vmatprep.subr.bf16.mxu1 %v269_v46 }
  0xf6   :  { %v221_v50 = vpop.f32.mrb[13].mxu0 }
  0xf7   :  { %v651_v51 = vpop.f32.mrb[14].mxu0 }
  0xf8   :  { %v271_v52 = vpack.c.bf16 %v651_v51, %v650_v49  ;;  %v224_v53 = vpop.f32.mrb[15].mxu0  ;;  %663 = vmatpush3.bf16.msra.mxu0 %v269_v46  ;;  %697 = vmatpush3.bf16.msra.mxu1 %v269_v46 }
  0xf9   :  { %v270_v54 = vpack.c.bf16 %v224_v53, %v221_v50 }
  0xfb   :  { %664 = vmatprep.subr.bf16.mxu0 %v270_v54  ;;  %690 = vmatprep.subr.bf16.mxu1 %v270_v54 }
  0xfc   :  { %665 = vmatpush3.bf16.msra.mxu0 %v270_v54  ;;  %698 = vmatpush3.bf16.msra.mxu1 %v270_v54 }
  0xfd   :  { %666 = vmatprep.subr.bf16.mxu0 %v271_v52  ;;  %691 = vmatprep.subr.bf16.mxu1 %v271_v52 }
 0x100   :  { %667 = vmatpush3.bf16.msra.mxu0 %v271_v52  ;;  %699 = vmatpush3.bf16.msra.mxu1 %v271_v52  ;;  %v509_v52 = vpop.permute.xlu0 %508 }
 0x103   :  { %669 = vmatmul.mubr.bf16.vlgmr.msra.gmra.mrb[16].mxu0 %v241_v56  ;;  %673 = vmatmul.mubr.bf16.vlgmr.msra.gmra.mrb[0].mxu1 %v243_v57  ;;  %v514_v56 = vpop.permute.xlu1 %513 }
 0x104   :  { %676 = vmatprep.mubr.bf16.mxu1 %v244_v58 }
 0x10b   :  { %677 = vmatmul.mubr.bf16.gmra.mrb[4].mxu1 %v245_v60 }
 0x10c   :  { %680 = vmatprep.mubr.bf16.mxu1 %v246_v61 }
 0x113   :  { %681 = vmatmul.mubr.bf16.gmra.mrb[8].mxu1 %v247_v62 }
 0x1d6   :  { %v670_v9 = vpop.f32.mrb[16].mxu0  ;;  %v674_v10 = vpop.f32.mrb[0].mxu1 }
 0x1d7   :  { %v306_v11 = vpop.f32.mrb[17].mxu0  ;;  %v322_v12 = vpop.f32.mrb[1].mxu1  ;;  %v518_v16 = vmul.f32 %v670_v9, %v449_v63  ;;  %v522_v17 = vmul.f32 %v674_v10, %v469_v6 }
 0x1d8   :  { %v671_v14 = vpop.f32.mrb[18].mxu0  ;;  %v675_v15 = vpop.f32.mrb[2].mxu1  ;;  %v516_v20 = vmul.f32 %v439_v0, %v306_v11  ;;  %v520_v21 = vmul.f32 %v459_v4, %v322_v12 }
 0x1d9   :  { %v309_v18 = vpop.f32.mrb[19].mxu0  ;;  %v325_v19 = vpop.f32.mrb[3].mxu1  ;;  %v541_v22 = vadd.f32 %v884_v13, %v518_v16  ;;  %v545_v23 = vadd.f32 %v884_v13, %v522_v17  ;;  %v519_v24 = vmul.f32 %v671_v14, %v454_v1  ;;  %v523_v25 = vmul.f32 %v675_v15, %v474_v5 }
 0x1da   :  { %v539_v27 = vadd.f32 %v884_v13, %v516_v20  ;;  %v543_v28 = vadd.f32 %v884_v13, %v520_v21  ;;  %v517_v29 = vmul.f32 %v444_v2, %v309_v18  ;;  %v521_v30 = vmul.f32 %v464_v3, %v325_v19 }
 0x1db   :  { %557 = vst [vmem:[#allocation2 + $0x10] sm:$0xff] %v541_v22  ;;  %561 = vst [vmem:[#allocation2 + $0x30] sm:$0xff] %v545_v23  ;;  %v542_v31 = vadd.f32 %v884_v13, %v519_v24  ;;  %v546_v32 = vadd.f32 %v884_v13, %v523_v25 }
 0x1dc   :  { %555 = vst [vmem:[#allocation2] sm:$0xff] %v539_v27  ;;  %559 = vst [vmem:[#allocation2 + $0x20] sm:$0xff] %v543_v28  ;;  %v540_v34 = vadd.f32 %v884_v13, %v517_v29  ;;  %v544_v35 = vadd.f32 %v884_v13, %v521_v30 }
 0x1dd   :  { %558 = vst [vmem:[#allocation2 + $0x18] sm:$0xff] %v542_v31  ;;  %562 = vst [vmem:[#allocation2 + $0x38] sm:$0xff] %v546_v32 }
 0x1de   :  { %v678_v36 = vpop.f32.mrb[4].mxu1  ;;  %556 = vst [vmem:[#allocation2 + $0x8] sm:$0xff] %v540_v34  ;;  %560 = vst [vmem:[#allocation2 + $0x28] sm:$0xff] %v544_v35 }
 0x1df   :  { %v338_v37 = vpop.f32.mrb[5].mxu1  ;;  %v526_v39 = vmul.f32 %v678_v36, %v489_v26 }
 0x1e0   :  { %v679_v38 = vpop.f32.mrb[6].mxu1  ;;  %v524_v42 = vmul.f32 %v479_v8, %v338_v37 }
 0x1e1   :  { %v341_v40 = vpop.f32.mrb[7].mxu1  ;;  %v549_v43 = vadd.f32 %v884_v13, %v526_v39  ;;  %v527_v44 = vmul.f32 %v679_v38, %v494_v33 }
 0x1e2   :  { %v547_v46 = vadd.f32 %v884_v13, %v524_v42  ;;  %v525_v47 = vmul.f32 %v484_v7, %v341_v40 }
 0x1e3   :  { %565 = vst [vmem:[#allocation2 + $0x50] sm:$0xff] %v549_v43  ;;  %v550_v48 = vadd.f32 %v884_v13, %v527_v44 }
 0x1e4   :  { %563 = vst [vmem:[#allocation2 + $0x40] sm:$0xff] %v547_v46  ;;  %v548_v49 = vadd.f32 %v884_v13, %v525_v47 }
 0x1e5   :  { %566 = vst [vmem:[#allocation2 + $0x58] sm:$0xff] %v550_v48 }
 0x1e6   :  { %v682_v50 = vpop.f32.mrb[8].mxu1  ;;  %564 = vst [vmem:[#allocation2 + $0x48] sm:$0xff] %v548_v49 }
 0x1e7   :  { %v354_v51 = vpop.f32.mrb[9].mxu1  ;;  %v530_v54 = vmul.f32 %v682_v50, %v509_v52 }
 0x1e8   :  { %v683_v53 = vpop.f32.mrb[10].mxu1  ;;  %v528_v57 = vmul.f32 %v499_v41, %v354_v51 }
 0x1e9   :  { %v357_v55 = vpop.f32.mrb[11].mxu1  ;;  %v553_v58 = vadd.f32 %v884_v13, %v530_v54  ;;  %v531_v59 = vmul.f32 %v683_v53, %v514_v56 }
 0x1ea   :  { %v551_v60 = vadd.f32 %v884_v13, %v528_v57  ;;  %v529_v61 = vmul.f32 %v504_v45, %v357_v55 }
 0x1eb   :  { %569 = vst [vmem:[#allocation2 + $0x70] sm:$0xff] %v553_v58  ;;  %v554_v62 = vadd.f32 %v884_v13, %v531_v59 }
 0x1ec   :  { %567 = vst [vmem:[#allocation2 + $0x60] sm:$0xff] %v551_v60  ;;  %v552_v63 = vadd.f32 %v884_v13, %v529_v61 }
 0x1ed   :  { %570 = vst [vmem:[#allocation2 + $0x78] sm:$0xff] %v554_v62 }
 0x1ee   :  { %568 = vst [vmem:[#allocation2 + $0x68] sm:$0xff] %v552_v63 }
 0x1ef   :  { %728 = shalt.err (!%p725_p4)
}
 0x1f0   :  { %s729_s2 = scalar_lea.hbm %s919_s5, 2048 }
 0x1f1   :  { %p730_p5 = scmp.ne.s32.totalorder %s919_s5, %s729_s2  ;;  %p733_p6 = scmp.lt.u32.totalorder %s729_s2, %s919_s5 }
 0x1f3   :  { %p735_p7 = pnand %p733_p6, %p730_p5 }
 0x1f5   :  { %738 = shalt.err (!%p735_p7)
}
 0x1f6   :  { %s743_s7 = smov 128   ;;  %s744_s8 = smov 8  }
 0x1f7   :  { %582 = dma.vmem_to_hbm [thread:$0]  %s577_s24, 2048, %s919_s5, [#allocation3], %s743_s7, %s743_s7, %s744_s8  }
 0x1f8   :  { %739 = dma.done.wait [#allocation3], 2048  }
 0x1f9   :  { %740 = vsyncadd [#allocation3], 4294965248 }
 0x1fa   :  { %586 = vsyncpa [#allocation3], 1 }

</bundles_post_ra>
